<compile_context>
chip_gen: v7x
topology: tpu7x:2x2x1
jax: 0.10.0
libtpu: 0.0.40
codegen_flags: <defaults>
</compile_context>

<pallas_src>
import numpy as np
import jax
import jax.numpy as jnp
from jax.experimental import pallas as pl
from jax.experimental.pallas import tpu as pltpu

NEURON = 64        # GCN hidden width
FC_HIDDEN = 32     # fc1 width
OUT_PAD = 128      # lane-dense padded fc2 output width (real output is 1 col)
NUM_CONVS = 5


def gcnnet_kernel(adj_ref, x_ref, cw_ref, cb_ref, pool_ref,
                  fc1w_ref, fc2w_ref, fcb_ref, out_ref):
    """Fused forward: 5x(GCNConv + ReLU) -> global_add_pool -> fc1+ReLU -> fc2."""
    adj = adj_ref[...]                                   # (N, N)  bf16, loaded once
    h = x_ref[...]                                       # (N, 64) bf16 (padded feats)

    # Unrolled 5-layer GCN stack over the stacked weight/bias operands.
    for layer in range(NUM_CONVS):
        w = cw_ref[layer]                                # (64, 64) bf16
        b = cb_ref[layer]                                # (1, 64)  f32, read once
        # X @ W  (MXU, bf16 in / f32 acc), narrowed to bf16 for the propagate dot.
        hw = jnp.dot(h, w, preferred_element_type=jnp.float32).astype(jnp.bfloat16)
        # Â @ (X W)  (MXU, f32 acc)
        agg = jnp.dot(adj, hw, preferred_element_type=jnp.float32)
        # bias + ReLU in f32 on the VPU, then narrow for the next layer's dot.
        h = jnp.maximum(agg + b, 0.0).astype(jnp.bfloat16)

    # global_add_pool as a matmul with the one-hot membership matrix: (G, 64) f32.
    pooled = jnp.dot(pool_ref[...], h, preferred_element_type=jnp.float32)

    # fc1 + ReLU  (f32 epilogue)
    fb1 = fcb_ref[0][:, :FC_HIDDEN]                      # (1, 32) f32
    z = jnp.maximum(
        jnp.dot(pooled.astype(jnp.bfloat16), fc1w_ref[...],
                preferred_element_type=jnp.float32) + fb1,
        0.0)                                             # (G, 32) f32

    # fc2 emitted into a lane-dense 128-wide block (column 0 is the prediction).
    out = jnp.dot(z.astype(jnp.bfloat16), fc2w_ref[...],
                  preferred_element_type=jnp.float32) + fcb_ref[1]   # (G, 128)
    out_ref[...] = out


# --------------------------------------------------------------------------- #
# Host-side glue (graph preprocessing done once, parameter packing done once)  #
# --------------------------------------------------------------------------- #

def gcn_normalize(edge_index, num_nodes):
    """Dense D^-1/2 (A + I) D^-1/2 as used by GCNConv (plain JAX, run once)."""
    src, dst = edge_index
    a = jnp.zeros((num_nodes, num_nodes), jnp.float32)
    a = a.at[src, dst].set(1.0)
    idx = jnp.arange(num_nodes)
    a = a.at[idx, idx].set(1.0)   # add_remaining_self_loops (idempotent: set, not add)
    deg = jnp.sum(a, axis=1)
    dinv = jnp.where(deg > 0, 1.0 / jnp.sqrt(deg), 0.0)
    return a * dinv[:, None] * dinv[None, :]


def build_graph_structures(edge_index, batch, num_nodes, num_graphs):
    """Graph-structure preprocessing: computed ONCE and reused across forwards."""
    adj = gcn_normalize(edge_index, num_nodes).astype(jnp.bfloat16)          # (N, N)
    pool = jax.nn.one_hot(batch, num_graphs, dtype=jnp.float32).T            # (G, N)
    return adj, pool.astype(jnp.bfloat16)


def pack_params(params):
    """Stack / pad / cast parameters once so the kernel sees 6 parameter operands."""
    conv_w, conv_b = [], []
    for w, b in params["convs"]:
        if w.shape[0] < NEURON:                       # conv1: (F, 64) -> (64, 64)
            w = jnp.pad(w, ((0, NEURON - w.shape[0]), (0, 0)))
        conv_w.append(w)
        conv_b.append(b.reshape(1, NEURON))
    conv_w = jnp.stack(conv_w).astype(jnp.bfloat16)   # (5, 64, 64)
    conv_b = jnp.stack(conv_b).astype(jnp.float32)    # (5, 1, 64)

    fc1_w = params["fc1_w"].astype(jnp.bfloat16)      # (64, 32)
    fc2_w = jnp.pad(params["fc2_w"],
                    ((0, 0), (0, OUT_PAD - params["fc2_w"].shape[1]))
                    ).astype(jnp.bfloat16)            # (32, 128)
    fc_b = jnp.zeros((2, 1, OUT_PAD), jnp.float32)
    fc_b = fc_b.at[0, 0, :FC_HIDDEN].set(params["fc1_b"].reshape(-1))
    fc_b = fc_b.at[1, 0, :1].set(params["fc2_b"].reshape(-1))
    return conv_w, conv_b, fc1_w, fc2_w, fc_b


def gcnnet_forward(x, adj, pool, conv_w, conv_b, fc1_w, fc2_w, fc_b):
    n, f = x.shape
    g = pool.shape[0]
    # Zero-pad input features to the hidden width so conv1 shares the stacked
    # (5, 64, 64) weight layout (conv1's weight rows are zero-padded to match).
    x_pad = jnp.pad(x, ((0, 0), (0, NEURON - f))).astype(jnp.bfloat16)

    flops = 2 * (NUM_CONVS * (n * NEURON * NEURON + n * n * NEURON)
                 + g * n * NEURON + g * NEURON * FC_HIDDEN + g * FC_HIDDEN)
    bytes_accessed = (adj.size * 2 + x_pad.size * 2 + conv_w.size * 2
                      + conv_b.size * 4 + pool.size * 2 + fc1_w.size * 2
                      + fc2_w.size * 2 + fc_b.size * 4 + g * OUT_PAD * 4)

    vmem = pl.BlockSpec(memory_space=pltpu.MemorySpace.VMEM)
    out_pad = pl.pallas_call(
        gcnnet_kernel,
        out_shape=jax.ShapeDtypeStruct((g, OUT_PAD), jnp.float32),
        in_specs=[vmem] * 8,
        out_specs=vmem,
        cost_estimate=pl.CostEstimate(flops=flops, transcendentals=0,
                                      bytes_accessed=bytes_accessed),
    )(adj, x_pad, conv_w, conv_b, pool, fc1_w, fc2_w, fc_b)
    return out_pad[:, :1]                              # (G, 1)


def init_params(key, num_features):
    """Deterministic synthetic parameters matching GcnNet.__init__ shapes."""
    dims = [(num_features, NEURON)] + [(NEURON, NEURON)] * 4
    convs = []
    for din, dout in dims:
        kw, key = jax.random.split(key)
        scale = 1.0 / np.sqrt(din)
        w = scale * jax.random.normal(kw, (din, dout), jnp.float32)
        b = jnp.zeros((1, dout), jnp.float32)
        convs.append((w, b))
    k1, k2, key = jax.random.split(key, 3)
    fc1_w = (1.0 / np.sqrt(NEURON)) * jax.random.normal(k1, (NEURON, FC_HIDDEN), jnp.float32)
    fc1_b = jnp.zeros((1, FC_HIDDEN), jnp.float32)
    fc2_w = (1.0 / np.sqrt(FC_HIDDEN)) * jax.random.normal(k2, (FC_HIDDEN, 1), jnp.float32)
    fc2_b = jnp.zeros((1, 1), jnp.float32)
    return {"convs": convs, "fc1_w": fc1_w, "fc1_b": fc1_b,
            "fc2_w": fc2_w, "fc2_b": fc2_b}


if __name__ == "__main__":
    key = jax.random.PRNGKey(0)

    # Two ring graphs of 8 nodes each (16 nodes total), 4 input features.
    num_features = 4
    nodes_per_graph = 8
    num_graphs = 2
    n = nodes_per_graph * num_graphs

    src_list, dst_list = [], []
    for g in range(num_graphs):
        off = g * nodes_per_graph
        for i in range(nodes_per_graph):
            j = (i + 1) % nodes_per_graph
            src_list += [off + i, off + j]      # undirected ring: both directions
            dst_list += [off + j, off + i]
    edge_index = jnp.array([src_list, dst_list], dtype=jnp.int32)
    batch = jnp.repeat(jnp.arange(num_graphs, dtype=jnp.int32), nodes_per_graph)

    kx, key = jax.random.split(key)
    x = jax.random.normal(kx, (n, num_features), jnp.float32)
    params = init_params(key, num_features)

    # One-time preprocessing (hoisted out of the per-forward hot path).
    adj, pool = build_graph_structures(edge_index, batch, n, num_graphs)
    conv_w, conv_b, fc1_w, fc2_w, fc_b = pack_params(params)
    adj, pool, conv_w, conv_b, fc1_w, fc2_w, fc_b = jax.block_until_ready(
        (adj, pool, conv_w, conv_b, fc1_w, fc2_w, fc_b))

    fwd = jax.jit(gcnnet_forward)
    out = fwd(x, adj, pool, conv_w, conv_b, fc1_w, fc2_w, fc_b)
    out = jax.block_until_ready(out)

    assert out.shape == (num_graphs, 1)
    assert np.all(np.isfinite(np.asarray(out)))
    print("KERNEL_OK")
</pallas_src>

<mosaic_0001>
module attributes {stable_mosaic.version = 11 : i64} {
  func.func @gcnnet_kernel(%arg0: memref<16x16xbf16, #tpu.memory_space<vmem>>, %arg1: memref<16x64xbf16, #tpu.memory_space<vmem>>, %arg2: memref<5x64x64xbf16, #tpu.memory_space<vmem>>, %arg3: memref<5x1x64xf32, #tpu.memory_space<vmem>>, %arg4: memref<2x16xbf16, #tpu.memory_space<vmem>>, %arg5: memref<64x32xbf16, #tpu.memory_space<vmem>>, %arg6: memref<32x128xbf16, #tpu.memory_space<vmem>>, %arg7: memref<2x1x128xf32, #tpu.memory_space<vmem>>, %arg8: memref<2x128xf32, #tpu.memory_space<vmem>>) attributes {dimension_semantics = [], scalar_prefetch = 0 : i64, scratch_operands = 0 : i64, tpu.core_type = #tpu.core_type<tc>} {
    %c0 = arith.constant 0 : index
    %c0_0 = arith.constant 0 : index
    %0 = vector.load %arg0[%c0, %c0_0] : memref<16x16xbf16, #tpu.memory_space<vmem>>, vector<16x16xbf16>
    %c0_1 = arith.constant 0 : index
    %c0_2 = arith.constant 0 : index
    %1 = vector.load %arg1[%c0_1, %c0_2] : memref<16x64xbf16, #tpu.memory_space<vmem>>, vector<16x64xbf16>
    %c0_3 = arith.constant 0 : index
    %c0_4 = arith.constant 0 : index
    %c0_5 = arith.constant 0 : index
    %2 = vector.load %arg2[%c0_3, %c0_4, %c0_5] : memref<5x64x64xbf16, #tpu.memory_space<vmem>>, vector<1x64x64xbf16>
    %3 = vector.shape_cast %2 : vector<1x64x64xbf16> to vector<64x64xbf16>
    %c0_6 = arith.constant 0 : index
    %c0_7 = arith.constant 0 : index
    %c0_8 = arith.constant 0 : index
    %4 = vector.load %arg3[%c0_6, %c0_7, %c0_8] : memref<5x1x64xf32, #tpu.memory_space<vmem>>, vector<1x1x64xf32>
    %5 = vector.shape_cast %4 : vector<1x1x64xf32> to vector<1x64xf32>
    %cst = arith.constant dense<0.000000e+00> : vector<16x64xf32>
    %6 = tpu.matmul %1, %3, %cst {dimension_numbers = #tpu.dot_dimension_numbers<[1], [0], [0], [1], [0, 0, 1, 1], [], []>} : vector<16x64xbf16>, vector<64x64xbf16>, vector<16x64xf32> -> vector<16x64xf32>
    %7 = arith.truncf %6 : vector<16x64xf32> to vector<16x64xbf16>
    %cst_9 = arith.constant dense<0.000000e+00> : vector<16x64xf32>
    %8 = tpu.matmul %0, %7, %cst_9 {dimension_numbers = #tpu.dot_dimension_numbers<[1], [0], [0], [1], [0, 0, 1, 1], [], []>} : vector<16x16xbf16>, vector<16x64xbf16>, vector<16x64xf32> -> vector<16x64xf32>
    %9 = vector.broadcast %5 : vector<1x64xf32> to vector<16x64xf32>
    %10 = arith.addf %8, %9 : vector<16x64xf32>
    %cst_10 = arith.constant 0.000000e+00 : f32
    %11 = vector.broadcast %cst_10 : f32 to vector<16x64xf32>
    %12 = arith.maximumf %10, %11 : vector<16x64xf32>
    %13 = arith.truncf %12 : vector<16x64xf32> to vector<16x64xbf16>
    %c1 = arith.constant 1 : index
    %c0_11 = arith.constant 0 : index
    %c0_12 = arith.constant 0 : index
    %14 = vector.load %arg2[%c1, %c0_11, %c0_12] : memref<5x64x64xbf16, #tpu.memory_space<vmem>>, vector<1x64x64xbf16>
    %15 = vector.shape_cast %14 : vector<1x64x64xbf16> to vector<64x64xbf16>
    %c1_13 = arith.constant 1 : index
    %c0_14 = arith.constant 0 : index
    %c0_15 = arith.constant 0 : index
    %16 = vector.load %arg3[%c1_13, %c0_14, %c0_15] : memref<5x1x64xf32, #tpu.memory_space<vmem>>, vector<1x1x64xf32>
    %17 = vector.shape_cast %16 : vector<1x1x64xf32> to vector<1x64xf32>
    %cst_16 = arith.constant dense<0.000000e+00> : vector<16x64xf32>
    %18 = tpu.matmul %13, %15, %cst_16 {dimension_numbers = #tpu.dot_dimension_numbers<[1], [0], [0], [1], [0, 0, 1, 1], [], []>} : vector<16x64xbf16>, vector<64x64xbf16>, vector<16x64xf32> -> vector<16x64xf32>
    %19 = arith.truncf %18 : vector<16x64xf32> to vector<16x64xbf16>
    %cst_17 = arith.constant dense<0.000000e+00> : vector<16x64xf32>
    %20 = tpu.matmul %0, %19, %cst_17 {dimension_numbers = #tpu.dot_dimension_numbers<[1], [0], [0], [1], [0, 0, 1, 1], [], []>} : vector<16x16xbf16>, vector<16x64xbf16>, vector<16x64xf32> -> vector<16x64xf32>
    %21 = vector.broadcast %17 : vector<1x64xf32> to vector<16x64xf32>
    %22 = arith.addf %20, %21 : vector<16x64xf32>
    %cst_18 = arith.constant 0.000000e+00 : f32
    %23 = vector.broadcast %cst_18 : f32 to vector<16x64xf32>
    %24 = arith.maximumf %22, %23 : vector<16x64xf32>
    %25 = arith.truncf %24 : vector<16x64xf32> to vector<16x64xbf16>
    %c2 = arith.constant 2 : index
    %c0_19 = arith.constant 0 : index
    %c0_20 = arith.constant 0 : index
    %26 = vector.load %arg2[%c2, %c0_19, %c0_20] : memref<5x64x64xbf16, #tpu.memory_space<vmem>>, vector<1x64x64xbf16>
    %27 = vector.shape_cast %26 : vector<1x64x64xbf16> to vector<64x64xbf16>
    %c2_21 = arith.constant 2 : index
    %c0_22 = arith.constant 0 : index
    %c0_23 = arith.constant 0 : index
    %28 = vector.load %arg3[%c2_21, %c0_22, %c0_23] : memref<5x1x64xf32, #tpu.memory_space<vmem>>, vector<1x1x64xf32>
    %29 = vector.shape_cast %28 : vector<1x1x64xf32> to vector<1x64xf32>
    %cst_24 = arith.constant dense<0.000000e+00> : vector<16x64xf32>
    %30 = tpu.matmul %25, %27, %cst_24 {dimension_numbers = #tpu.dot_dimension_numbers<[1], [0], [0], [1], [0, 0, 1, 1], [], []>} : vector<16x64xbf16>, vector<64x64xbf16>, vector<16x64xf32> -> vector<16x64xf32>
    %31 = arith.truncf %30 : vector<16x64xf32> to vector<16x64xbf16>
    %cst_25 = arith.constant dense<0.000000e+00> : vector<16x64xf32>
    %32 = tpu.matmul %0, %31, %cst_25 {dimension_numbers = #tpu.dot_dimension_numbers<[1], [0], [0], [1], [0, 0, 1, 1], [], []>} : vector<16x16xbf16>, vector<16x64xbf16>, vector<16x64xf32> -> vector<16x64xf32>
    %33 = vector.broadcast %29 : vector<1x64xf32> to vector<16x64xf32>
    %34 = arith.addf %32, %33 : vector<16x64xf32>
    %cst_26 = arith.constant 0.000000e+00 : f32
    %35 = vector.broadcast %cst_26 : f32 to vector<16x64xf32>
    %36 = arith.maximumf %34, %35 : vector<16x64xf32>
    %37 = arith.truncf %36 : vector<16x64xf32> to vector<16x64xbf16>
    %c3 = arith.constant 3 : index
    %c0_27 = arith.constant 0 : index
    %c0_28 = arith.constant 0 : index
    %38 = vector.load %arg2[%c3, %c0_27, %c0_28] : memref<5x64x64xbf16, #tpu.memory_space<vmem>>, vector<1x64x64xbf16>
    %39 = vector.shape_cast %38 : vector<1x64x64xbf16> to vector<64x64xbf16>
    %c3_29 = arith.constant 3 : index
    %c0_30 = arith.constant 0 : index
    %c0_31 = arith.constant 0 : index
    %40 = vector.load %arg3[%c3_29, %c0_30, %c0_31] : memref<5x1x64xf32, #tpu.memory_space<vmem>>, vector<1x1x64xf32>
    %41 = vector.shape_cast %40 : vector<1x1x64xf32> to vector<1x64xf32>
    %cst_32 = arith.constant dense<0.000000e+00> : vector<16x64xf32>
    %42 = tpu.matmul %37, %39, %cst_32 {dimension_numbers = #tpu.dot_dimension_numbers<[1], [0], [0], [1], [0, 0, 1, 1], [], []>} : vector<16x64xbf16>, vector<64x64xbf16>, vector<16x64xf32> -> vector<16x64xf32>
    %43 = arith.truncf %42 : vector<16x64xf32> to vector<16x64xbf16>
    %cst_33 = arith.constant dense<0.000000e+00> : vector<16x64xf32>
    %44 = tpu.matmul %0, %43, %cst_33 {dimension_numbers = #tpu.dot_dimension_numbers<[1], [0], [0], [1], [0, 0, 1, 1], [], []>} : vector<16x16xbf16>, vector<16x64xbf16>, vector<16x64xf32> -> vector<16x64xf32>
    %45 = vector.broadcast %41 : vector<1x64xf32> to vector<16x64xf32>
    %46 = arith.addf %44, %45 : vector<16x64xf32>
    %cst_34 = arith.constant 0.000000e+00 : f32
    %47 = vector.broadcast %cst_34 : f32 to vector<16x64xf32>
    %48 = arith.maximumf %46, %47 : vector<16x64xf32>
    %49 = arith.truncf %48 : vector<16x64xf32> to vector<16x64xbf16>
    %c4 = arith.constant 4 : index
    %c0_35 = arith.constant 0 : index
    %c0_36 = arith.constant 0 : index
    %50 = vector.load %arg2[%c4, %c0_35, %c0_36] : memref<5x64x64xbf16, #tpu.memory_space<vmem>>, vector<1x64x64xbf16>
    %51 = vector.shape_cast %50 : vector<1x64x64xbf16> to vector<64x64xbf16>
    %c4_37 = arith.constant 4 : index
    %c0_38 = arith.constant 0 : index
    %c0_39 = arith.constant 0 : index
    %52 = vector.load %arg3[%c4_37, %c0_38, %c0_39] : memref<5x1x64xf32, #tpu.memory_space<vmem>>, vector<1x1x64xf32>
    %53 = vector.shape_cast %52 : vector<1x1x64xf32> to vector<1x64xf32>
    %cst_40 = arith.constant dense<0.000000e+00> : vector<16x64xf32>
    %54 = tpu.matmul %49, %51, %cst_40 {dimension_numbers = #tpu.dot_dimension_numbers<[1], [0], [0], [1], [0, 0, 1, 1], [], []>} : vector<16x64xbf16>, vector<64x64xbf16>, vector<16x64xf32> -> vector<16x64xf32>
    %55 = arith.truncf %54 : vector<16x64xf32> to vector<16x64xbf16>
    %cst_41 = arith.constant dense<0.000000e+00> : vector<16x64xf32>
    %56 = tpu.matmul %0, %55, %cst_41 {dimension_numbers = #tpu.dot_dimension_numbers<[1], [0], [0], [1], [0, 0, 1, 1], [], []>} : vector<16x16xbf16>, vector<16x64xbf16>, vector<16x64xf32> -> vector<16x64xf32>
    %57 = vector.broadcast %53 : vector<1x64xf32> to vector<16x64xf32>
    %58 = arith.addf %56, %57 : vector<16x64xf32>
    %cst_42 = arith.constant 0.000000e+00 : f32
    %59 = vector.broadcast %cst_42 : f32 to vector<16x64xf32>
    %60 = arith.maximumf %58, %59 : vector<16x64xf32>
    %61 = arith.truncf %60 : vector<16x64xf32> to vector<16x64xbf16>
    %c0_43 = arith.constant 0 : index
    %c0_44 = arith.constant 0 : index
    %62 = vector.load %arg4[%c0_43, %c0_44] : memref<2x16xbf16, #tpu.memory_space<vmem>>, vector<2x16xbf16>
    %cst_45 = arith.constant dense<0.000000e+00> : vector<2x64xf32>
    %63 = tpu.matmul %62, %61, %cst_45 {dimension_numbers = #tpu.dot_dimension_numbers<[1], [0], [0], [1], [0, 0, 1, 1], [], []>} : vector<2x16xbf16>, vector<16x64xbf16>, vector<2x64xf32> -> vector<2x64xf32>
    %c0_46 = arith.constant 0 : index
    %c0_47 = arith.constant 0 : index
    %c0_48 = arith.constant 0 : index
    %64 = vector.load %arg7[%c0_46, %c0_47, %c0_48] : memref<2x1x128xf32, #tpu.memory_space<vmem>>, vector<1x1x128xf32>
    %65 = vector.shape_cast %64 : vector<1x1x128xf32> to vector<1x128xf32>
    %66 = vector.extract_strided_slice %65 {offsets = [0, 0], sizes = [1, 32], strides = [1, 1]} : vector<1x128xf32> to vector<1x32xf32>
    %67 = arith.truncf %63 : vector<2x64xf32> to vector<2x64xbf16>
    %c0_49 = arith.constant 0 : index
    %c0_50 = arith.constant 0 : index
    %68 = vector.load %arg5[%c0_49, %c0_50] : memref<64x32xbf16, #tpu.memory_space<vmem>>, vector<64x32xbf16>
    %cst_51 = arith.constant dense<0.000000e+00> : vector<2x32xf32>
    %69 = tpu.matmul %67, %68, %cst_51 {dimension_numbers = #tpu.dot_dimension_numbers<[1], [0], [0], [1], [0, 0, 1, 1], [], []>} : vector<2x64xbf16>, vector<64x32xbf16>, vector<2x32xf32> -> vector<2x32xf32>
    %70 = vector.broadcast %66 : vector<1x32xf32> to vector<2x32xf32>
    %71 = arith.addf %69, %70 : vector<2x32xf32>
    %cst_52 = arith.constant 0.000000e+00 : f32
    %72 = vector.broadcast %cst_52 : f32 to vector<2x32xf32>
    %73 = arith.maximumf %71, %72 : vector<2x32xf32>
    %74 = arith.truncf %73 : vector<2x32xf32> to vector<2x32xbf16>
    %c0_53 = arith.constant 0 : index
    %c0_54 = arith.constant 0 : index
    %75 = vector.load %arg6[%c0_53, %c0_54] : memref<32x128xbf16, #tpu.memory_space<vmem>>, vector<32x128xbf16>
    %cst_55 = arith.constant dense<0.000000e+00> : vector<2x128xf32>
    %76 = tpu.matmul %74, %75, %cst_55 {dimension_numbers = #tpu.dot_dimension_numbers<[1], [0], [0], [1], [0, 0, 1, 1], [], []>} : vector<2x32xbf16>, vector<32x128xbf16>, vector<2x128xf32> -> vector<2x128xf32>
    %c1_56 = arith.constant 1 : index
    %c0_57 = arith.constant 0 : index
    %c0_58 = arith.constant 0 : index
    %77 = vector.load %arg7[%c1_56, %c0_57, %c0_58] : memref<2x1x128xf32, #tpu.memory_space<vmem>>, vector<1x1x128xf32>
    %78 = vector.shape_cast %77 : vector<1x1x128xf32> to vector<1x128xf32>
    %79 = vector.broadcast %78 : vector<1x128xf32> to vector<2x128xf32>
    %80 = arith.addf %76, %79 : vector<2x128xf32>
    %c0_59 = arith.constant 0 : index
    %c0_60 = arith.constant 0 : index
    %81 = vector.load %arg8[%c0_59, %c0_60] : memref<2x128xf32, #tpu.memory_space<vmem>>, vector<2x128xf32>
    tpu.vector_store %arg8[%c0_59, %c0_60], %80 {strides = array<i32>} : memref<2x128xf32, #tpu.memory_space<vmem>>, vector<2x128xf32>,
    return
  }
}

</mosaic_0001>

<bundles_post_ra>
// kernel: gcnnet_forward.1
= control target key start
LH: loop header
LB: loop body
LE: loop exit
PB: predicated region body
PF: predicated region fallthrough
CT: control target
= control target key end

     0   :  { %13 = vsyncpa [#allocation3], 0  ;;  %s1185_s27 = smov [#allocation2]   ;;  %s1375_s0 = inlined_call_operand.vmem [shape: bf16[16,16], index: 0, kind: input, shape index: {}]   ;;  %s1376_s1 = inlined_call_operand.vmem [shape: bf16[16,64], index: 1, kind: input, shape index: {}]   ;;  %s1377_s2 = inlined_call_operand.hbm [shape: bf16[5,64,64], index: 2, kind: input, shape index: {}]   ;;  %s1378_s3 = inlined_call_operand.vmem [shape: f32[5,1,64], index: 3, kind: input, shape index: {}]   ;;  %s1379_s4 = inlined_call_operand.vmem [shape: bf16[2,16], index: 4, kind: input, shape index: {}]   ;;  %s1380_s5 = inlined_call_operand.vmem [shape: bf16[64,32], index: 5, kind: input, shape index: {}]   ;;  %s1381_s6 = inlined_call_operand.vmem [shape: bf16[32,128], index: 6, kind: input, shape index: {}]   ;;  %s1382_s7 = inlined_call_operand.vmem [shape: f32[2,1,128], index: 7, kind: input, shape index: {}]   ;;  %s1383_s8 = inlined_call_operand.vmem [shape: f32[2,128], index: 8, kind: output, shape index: {}]  }
   0x1   :  { %s23_s28 = sshll.u32 %s1185_s27, 4  ;;  %s1161_s9 = scalar_lea.hbm %s1377_s2, 2560  ;;  %s24_s28 = int_to_ptr.vmem [resolvable:$true] %s23_s28 }
   0x2   :  { %p1162_p0 = scmp.ne.s32.totalorder %s1377_s2, %s1161_s9  ;;  %p1165_p1 = scmp.lt.u32.totalorder %s1161_s9, %s1377_s2 }
   0x4   :  { %p1167_p2 = pnand %p1165_p1, %p1162_p0 }
   0x6   :  { %1170 = shalt.err (!%p1167_p2)
}
   0x7   :  { %s1171_s14 = scalar_lea.vmem %s24_s28, 2560  ;;  %p1176_p4 = scmp.lt.s32.totalorder %s24_s28, %s24_s28 }
   0x8   :  { %p1172_p3 = scmp.ne.s32.totalorder %s24_s28, %s1171_s14  ;;  %p1177_p5 = scmp.lt.s32.totalorder %s1171_s14, %s1171_s14 }
   0xa   :  { %p1178_p6 = por %p1177_p5, %p1176_p4 }
   0xc   :  { %p1179_p7 = pnand %p1178_p6, %p1172_p3 }
   0xe   :  { %1182 = shalt.err (!%p1179_p7)
}
   0xf   :  { %s1186_s15 = smov 64   ;;  %s1187_s16 = smov 4  }
  0x10   :  { %29 = dma.hbm_to_vmem [thread:$0]  %s1377_s2, 2560, %s24_s28, [#allocation3], %s1186_s15, %s1186_s15, %s1187_s16  }
  0x11   :  { %1183 = dma.done.wait [#allocation3], 2560  }
  0x12   :  { %1184 = vsyncadd [#allocation3], 4294964736  ;;  %v1188_v0 = vmov 0.0   ;;  %vm1189_vm0 = vmmov 0   ;;  %v1133_v1 = vld [vmem:[#allocation2] sm:$0xff]   ;;  %v1134_v2 = vld [vmem:[#allocation2 + $0x8] sm:$0xff]  }
  0x13   :  { %1012 = vmatprep.subr.bf16.mxu0 %v1188_v0  ;;  %1020 = vmatprep.mubr.msk.bf16.mxu0 %vm1189_vm0, %v1188_v0  ;;  %v1135_v3 = vld [vmem:[#allocation2 + $0x10] sm:$0xff]   ;;  %vm86_vm1 = vcmask 523264   ;;  %v1136_v4 = vld [vmem:[#allocation2 + $0x18] sm:$0xff]   ;;  %v1137_v5 = vld [vmem:[%s1376_s1] sm:$0xff]   ;;  %vm143_vm2 = vcmask 130048   ;;  %vm864_vm3 = vcmask 261120  }
  0x14   :  { %1024 = vmatprep.subr.bf16.mxu1 %v1188_v0  ;;  %1026 = vmatprep.mubr.msk.bf16.mxu1 %vm1189_vm0, %v1188_v0  ;;  %v1266_v11 = vld [vmem:[%s1375_s0] sm:$0xff]   ;;  %v1140_v13 = vld [vmem:[#allocation2 + $0x28] sm:$0xff]   ;;  %v1141_v14 = vld [vmem:[#allocation2 + $0x30] sm:$0xff]  }
  0x15   :  { %1013 = vmatpush3.bf16.msra.mxu0 %v1133_v1  ;;  %v1139_v12 = vld [vmem:[#allocation2 + $0x20] sm:$0xff]   ;;  %v1142_v15 = vld [vmem:[#allocation2 + $0x38] sm:$0xff]   ;;  %v1144_v27 = vld [vmem:[#allocation2 + $0x48] sm:$0xff]  }
  0x16   :  { %1014 = vmatprep.subr.bf16.mxu0 %v1188_v0  ;;  %v920_v16 = vld [vmem:[%s1378_s3] ss:$0 sm:$0xff]  ;;  %v1145_v33 = vld [vmem:[#allocation2 + $0x50] sm:$0xff]   ;;  %v1146_v34 = vld [vmem:[#allocation2 + $0x58] sm:$0xff]  }
  0x17   :  { %v1143_v26 = vld [vmem:[#allocation2 + $0x40] sm:$0xff]   ;;  %v1148_v51 = vld [vmem:[#allocation2 + $0x68] sm:$0xff]   ;;  %v1149_v52 = vld [vmem:[#allocation2 + $0x70] sm:$0xff]  }
  0x18   :  { %v929_v35 = vld [vmem:[%s1378_s3 + $0x1] ss:$0 sm:$0xff]  ;;  %v1150_v53 = vld [vmem:[#allocation2 + $0x78] sm:$0xff]   ;;  %v937_v54 = vld [vmem:[%s1378_s3 + $0x2] ss:$0 sm:$0xff] }
  0x19   :  { %1015 = vmatpush3.bf16.msra.mxu0 %v1134_v2  ;;  %v1147_v50 = vld [vmem:[#allocation2 + $0x60] sm:$0xff]  }
  0x1a   :  { %1016 = vmatprep.subr.bf16.mxu0 %v1188_v0 }
  0x1d   :  { %1017 = vmatpush3.bf16.msra.mxu0 %v1135_v3 }
  0x1e   :  { %1018 = vmatprep.subr.bf16.mxu0 %v1188_v0 }
  0x21   :  { %1019 = vmatpush3.bf16.msra.mxu0 %v1136_v4 }
  0x22   :  { %1042 = vmatprep.subr.bf16.mxu0 %v1188_v0 }
  0x24   :  { %1021 = vmatmul.mubr.msk.bf16.vlgmr.msra.gmra.mrb[0].mxu0 %vm86_vm1, %v1137_v5 }
  0x25   :  { %1044 = vmatprep.mubr.msk.bf16.mxu0 %vm1189_vm0, %v1188_v0 }
  0xf7   :  { %v124_v6 = vpop.f32.mrb[0].mxu0 }
  0xf8   :  { %v1022_v7 = vpop.f32.mrb[1].mxu0 }
  0xf9   :  { %v127_v8 = vpop.f32.mrb[2].mxu0  ;;  %v1152_v7 = vld [vmem:[#allocation2 + $0x88] sm:$0xff]  }
  0xfa   :  { %v131_v9 = vpack.c.bf16 %v127_v8, %v124_v6  ;;  %v1023_v10 = vpop.f32.mrb[3].mxu0  ;;  %v1151_v6 = vld [vmem:[#allocation2 + $0x80] sm:$0xff]   ;;  %v1153_v8 = vld [vmem:[#allocation2 + $0x90] sm:$0xff]  }
  0xfb   :  { %v945_v10 = vld [vmem:[%s1378_s3 + $0x3] ss:$0 sm:$0xff] }
  0xfc   :  { %1025 = vmatpush3.bf16.msra.mxu1 %v131_v9  ;;  %v1154_v9 = vld [vmem:[#allocation2 + $0x98] sm:$0xff]  }
  0xfd   :  { %1030 = vmatprep.subr.bf16.mxu1 %v1188_v0 }
  0xff   :  { %1027 = vmatmul.mubr.msk.bf16.vlgmr.msra.gmra.mrb[0].mxu1 %vm143_vm2, %v1266_v11 }
 0x100   :  { %1031 = vmatpush3.bf16.msra.mxu1 %v1139_v12  ;;  %1038 = vmatprep.mubr.msk.bf16.mxu1 %vm1189_vm0, %v1188_v0 }
 0x101   :  { %1032 = vmatprep.subr.bf16.mxu1 %v1188_v0 }
 0x104   :  { %1033 = vmatpush3.bf16.msra.mxu1 %v1140_v13 }
 0x105   :  { %1034 = vmatprep.subr.bf16.mxu1 %v1188_v0 }
 0x108   :  { %1035 = vmatpush3.bf16.msra.mxu1 %v1141_v14 }
 0x109   :  { %1036 = vmatprep.subr.bf16.mxu1 %v1188_v0 }
 0x10c   :  { %1037 = vmatpush3.bf16.msra.mxu1 %v1142_v15 }
 0x10d   :  { %1048 = vmatprep.subr.bf16.mxu1 %v1188_v0 }
 0x1d2   :  { %v181_v17 = vpop.f32.mrb[0].mxu1 }
 0x1d3   :  { %v182_v18 = vadd.f32 %v920_v16, %v181_v17  ;;  %v1028_v19 = vpop.f32.mrb[1].mxu1 }
 0x1d4   :  { %v184_v20 = vpop.f32.mrb[2].mxu1 }
 0x1d5   :  { %v185_v21 = vadd.f32 %v920_v16, %v184_v20  ;;  %v1029_v22 = vpop.f32.mrb[3].mxu1  ;;  %v188_v23 = vmax.f32 %v182_v18, 0.0 }
 0x1d7   :  { %v189_v24 = vmax.f32 %v185_v21, 0.0 }
 0x1d9   :  { %v190_v25 = vpack.c.bf16 %v189_v24, %v188_v23 }
 0x1db   :  { %1039 = vmatmul.mubr.msk.bf16.vlgmr.msra.gmra.mrb[4].mxu1 %vm86_vm1, %v190_v25 }
 0x1dc   :  { %1056 = vmatprep.mubr.msk.bf16.mxu1 %vm1189_vm0, %v1188_v0  ;;  %1049 = vmatpush3.bf16.msra.mxu1 %v1143_v26  ;;  %v1155_v26 = vld [vmem:[%s1380_s5] sm:$0xff]  }
 0x1dd   :  { %1050 = vmatprep.subr.bf16.mxu1 %v1188_v0 }
 0x1e0   :  { %1051 = vmatpush3.bf16.msra.mxu1 %v1144_v27  ;;  %v1156_v27 = vld [vmem:[%s1380_s5 + $0x8] sm:$0xff]  }
 0x1e1   :  { %1052 = vmatprep.subr.bf16.mxu1 %v1188_v0 }
 0x1e4   :  { %1053 = vmatpush3.bf16.msra.mxu1 %v1145_v33 }
 0x1e5   :  { %1054 = vmatprep.subr.bf16.mxu1 %v1188_v0 }
 0x1e8   :  { %1055 = vmatpush3.bf16.msra.mxu1 %v1146_v34 }
 0x1e9   :  { %1078 = vmatprep.subr.bf16.mxu1 %v1188_v0 }
 0x2ae   :  { %v263_v28 = vpop.f32.mrb[4].mxu1 }
 0x2af   :  { %v1040_v29 = vpop.f32.mrb[5].mxu1 }
 0x2b0   :  { %v266_v30 = vpop.f32.mrb[6].mxu1 }
 0x2b1   :  { %v270_v31 = vpack.c.bf16 %v266_v30, %v263_v28  ;;  %v1041_v32 = vpop.f32.mrb[7].mxu1  ;;  %v1157_v28 = vld [vmem:[%s1380_s5 + $0x10] sm:$0xff]  }
 0x2b3   :  { %1043 = vmatpush3.bf16.msra.mxu0 %v270_v31 }
 0x2b4   :  { %1060 = vmatprep.subr.bf16.mxu0 %v1188_v0 }
 0x2b6   :  { %1045 = vmatmul.mubr.msk.bf16.vlgmr.msra.gmra.mrb[4].mxu0 %vm143_vm2, %v1266_v11 }
 0x2b7   :  { %1062 = vmatprep.mubr.msk.bf16.mxu0 %vm1189_vm0, %v1188_v0 }
 0x389   :  { %v311_v36 = vpop.f32.mrb[4].mxu0 }
 0x38a   :  { %v312_v37 = vadd.f32 %v929_v35, %v311_v36  ;;  %v1046_v38 = vpop.f32.mrb[5].mxu0 }
 0x38b   :  { %v314_v39 = vpop.f32.mrb[6].mxu0  ;;  %v711_v38 = vld [vmem:[%s1379_s4] sm:$0x1] }
 0x38c   :  { %v315_v40 = vadd.f32 %v929_v35, %v314_v39  ;;  %v1047_v41 = vpop.f32.mrb[7].mxu0  ;;  %v318_v42 = vmax.f32 %v312_v37, 0.0  ;;  %v1158_v39 = vld [vmem:[%s1380_s5 + $0x18] sm:$0xff]  }
 0x38e   :  { %v319_v43 = vmax.f32 %v315_v40, 0.0 }
 0x390   :  { %v320_v44 = vpack.c.bf16 %v319_v43, %v318_v42 }
 0x392   :  { %1057 = vmatmul.mubr.msk.bf16.vlgmr.msra.gmra.mrb[8].mxu1 %vm86_vm1, %v320_v44 }
 0x393   :  { %1080 = vmatprep.mubr.msk.bf16.mxu1 %vm1189_vm0, %v1188_v0 }
 0x465   :  { %v393_v45 = vpop.f32.mrb[8].mxu1 }
 0x466   :  { %v1058_v46 = vpop.f32.mrb[9].mxu1 }
 0x467   :  { %v396_v47 = vpop.f32.mrb[10].mxu1  ;;  %v1160_v46 = vld [vmem:[%s1381_s6 + $0x8] sm:$0xff]  }
 0x468   :  { %v400_v48 = vpack.c.bf16 %v396_v47, %v393_v45  ;;  %v1059_v49 = vpop.f32.mrb[11].mxu1  ;;  %v1159_v45 = vld [vmem:[%s1381_s6] sm:$0xff]  }
 0x469   :  { %v956_v47 = vld [vmem:[%s1382_s7] ss:$0 sm:$0xff] }
 0x46a   :  { %1061 = vmatpush3.bf16.msra.mxu0 %v400_v48 }
 0x46b   :  { %1066 = vmatprep.subr.bf16.mxu0 %v1188_v0 }
 0x46d   :  { %1063 = vmatmul.mubr.msk.bf16.vlgmr.msra.gmra.mrb[8].mxu0 %vm143_vm2, %v1266_v11 }
 0x46e   :  { %1067 = vmatpush3.bf16.msra.mxu0 %v1147_v50  ;;  %1074 = vmatprep.mubr.msk.bf16.mxu0 %vm1189_vm0, %v1188_v0 }
 0x46f   :  { %1068 = vmatprep.subr.bf16.mxu0 %v1188_v0 }
 0x472   :  { %1069 = vmatpush3.bf16.msra.mxu0 %v1148_v51 }
 0x473   :  { %1070 = vmatprep.subr.bf16.mxu0 %v1188_v0 }
 0x476   :  { %1071 = vmatpush3.bf16.msra.mxu0 %v1149_v52 }
 0x477   :  { %1072 = vmatprep.subr.bf16.mxu0 %v1188_v0 }
 0x47a   :  { %1073 = vmatpush3.bf16.msra.mxu0 %v1150_v53 }
 0x47b   :  { %1096 = vmatprep.subr.bf16.mxu0 %v1188_v0 }
 0x540   :  { %v441_v55 = vpop.f32.mrb[8].mxu0 }
 0x541   :  { %v442_v56 = vadd.f32 %v937_v54, %v441_v55  ;;  %v1064_v57 = vpop.f32.mrb[9].mxu0 }
 0x542   :  { %v444_v58 = vpop.f32.mrb[10].mxu0 }
 0x543   :  { %v445_v59 = vadd.f32 %v937_v54, %v444_v58  ;;  %v1065_v60 = vpop.f32.mrb[11].mxu0  ;;  %v448_v61 = vmax.f32 %v442_v56, 0.0 }
 0x545   :  { %v449_v62 = vmax.f32 %v445_v59, 0.0 }
 0x547   :  { %v450_v63 = vpack.c.bf16 %v449_v62, %v448_v61 }
 0x549   :  { %1075 = vmatmul.mubr.msk.bf16.vlgmr.msra.gmra.mrb[12].mxu0 %vm86_vm1, %v450_v63 }
 0x54a   :  { %1098 = vmatprep.mubr.msk.bf16.mxu0 %vm1189_vm0, %v1188_v0 }
 0x61c   :  { %v523_v1 = vpop.f32.mrb[12].mxu0 }
 0x61d   :  { %v1076_v2 = vpop.f32.mrb[13].mxu0 }
 0x61e   :  { %v526_v3 = vpop.f32.mrb[14].mxu0 }
 0x61f   :  { %v530_v4 = vpack.c.bf16 %v526_v3, %v523_v1  ;;  %v1077_v5 = vpop.f32.mrb[15].mxu0 }
 0x621   :  { %1079 = vmatpush3.bf16.msra.mxu1 %v530_v4 }
 0x622   :  { %1084 = vmatprep.subr.bf16.mxu1 %v1188_v0 }
 0x624   :  { %1081 = vmatmul.mubr.msk.bf16.vlgmr.msra.gmra.mrb[12].mxu1 %vm143_vm2, %v1266_v11 }
 0x625   :  { %1085 = vmatpush3.bf16.msra.mxu1 %v1151_v6  ;;  %1092 = vmatprep.mubr.msk.bf16.mxu1 %vm1189_vm0, %v1188_v0 }
 0x626   :  { %1086 = vmatprep.subr.bf16.mxu1 %v1188_v0 }
 0x629   :  { %1087 = vmatpush3.bf16.msra.mxu1 %v1152_v7 }
 0x62a   :  { %1088 = vmatprep.subr.bf16.mxu1 %v1188_v0 }
 0x62d   :  { %1089 = vmatpush3.bf16.msra.mxu1 %v1153_v8 }
 0x62e   :  { %1090 = vmatprep.subr.bf16.mxu1 %v1188_v0 }
 0x631   :  { %1091 = vmatpush3.bf16.msra.mxu1 %v1154_v9 }
 0x632   :  { %1108 = vmatprep.subr.bf16.mxu1 %v1188_v0 }
 0x6f7   :  { %v571_v12 = vpop.f32.mrb[12].mxu1 }
 0x6f8   :  { %v572_v13 = vadd.f32 %v945_v10, %v571_v12  ;;  %v1082_v14 = vpop.f32.mrb[13].mxu1 }
 0x6f9   :  { %v574_v15 = vpop.f32.mrb[14].mxu1 }
 0x6fa   :  { %v575_v16 = vadd.f32 %v945_v10, %v574_v15  ;;  %v1083_v17 = vpop.f32.mrb[15].mxu1  ;;  %v578_v18 = vmax.f32 %v572_v13, 0.0 }
 0x6fc   :  { %v579_v19 = vmax.f32 %v575_v16, 0.0 }
 0x6fe   :  { %v580_v20 = vpack.c.bf16 %v579_v19, %v578_v18 }
 0x700   :  { %1093 = vmatmul.mubr.msk.bf16.vlgmr.msra.gmra.mrb[16].mxu1 %vm86_vm1, %v580_v20 }
 0x701   :  { %1116 = vmatprep.mubr.msk.bf16.mxu1 %vm1189_vm0, %v1188_v0  ;;  %1109 = vmatpush3.bf16.msra.mxu1 %v1155_v26 }
 0x702   :  { %1110 = vmatprep.subr.bf16.mxu1 %v1188_v0 }
 0x705   :  { %1111 = vmatpush3.bf16.msra.mxu1 %v1156_v27 }
 0x706   :  { %1112 = vmatprep.subr.bf16.mxu1 %v1188_v0 }
 0x709   :  { %1113 = vmatpush3.bf16.msra.mxu1 %v1157_v28 }
 0x70a   :  { %1114 = vmatprep.subr.bf16.mxu1 %v1188_v0 }
 0x70d   :  { %1115 = vmatpush3.bf16.msra.mxu1 %v1158_v39 }
 0x7d3   :  { %v653_v21 = vpop.f32.mrb[16].mxu1 }
 0x7d4   :  { %v1094_v22 = vpop.f32.mrb[17].mxu1 }
 0x7d5   :  { %v656_v23 = vpop.f32.mrb[18].mxu1 }
 0x7d6   :  { %v660_v24 = vpack.c.bf16 %v656_v23, %v653_v21  ;;  %v1095_v25 = vpop.f32.mrb[19].mxu1 }
 0x7d8   :  { %1097 = vmatpush3.bf16.msra.mxu0 %v660_v24 }
 0x7d9   :  { %1102 = vmatprep.subr.bf16.mxu0 %v1188_v0 }
 0x7db   :  { %1099 = vmatmul.mubr.msk.bf16.vlgmr.msra.gmra.mrb[16].mxu0 %vm143_vm2, %v1266_v11  ;;  %v953_v11 = vld [vmem:[%s1378_s3 + $0x4] ss:$0 sm:$0xff] }
 0x7dc   :  { %1104 = vmatprep.mubr.msk.bf16.mxu0 %vm1189_vm0, %v1188_v0 }
 0x8ae   :  { %v701_v29 = vpop.f32.mrb[16].mxu0 }
 0x8af   :  { %v702_v30 = vadd.f32 %v953_v11, %v701_v29  ;;  %v1100_v31 = vpop.f32.mrb[17].mxu0 }
 0x8b0   :  { %v704_v32 = vpop.f32.mrb[18].mxu0 }
 0x8b1   :  { %v705_v33 = vadd.f32 %v953_v11, %v704_v32  ;;  %v1101_v34 = vpop.f32.mrb[19].mxu0  ;;  %v708_v35 = vmax.f32 %v702_v30, 0.0 }
 0x8b3   :  { %v709_v36 = vmax.f32 %v705_v33, 0.0 }
 0x8b5   :  { %v710_v37 = vpack.c.bf16 %v709_v36, %v708_v35 }
 0x8b7   :  { %1103 = vmatpush3.bf16.msra.mxu0 %v710_v37 }
 0x8b8   :  { %1120 = vmatprep.subr.bf16.mxu0 %v1188_v0 }
 0x8ba   :  { %1105 = vmatmul.mubr.msk.bf16.vlgmr.msra.gmra.mrb[20].mxu0 %vm143_vm2, %v711_v38 }
 0x8bb   :  { %1124 = vmatprep.mubr.msk.bf16.mxu0 %vm1189_vm0, %v1188_v0  ;;  %1121 = vmatpush3.bf16.msra.mxu0 %v1159_v45 }
 0x8bc   :  { %1122 = vmatprep.subr.bf16.mxu0 %v1188_v0  ;;  %v963_v0 = vld [vmem:[%s1382_s7 + $0x1] ss:$0 sm:$0xff] }
 0x8bf   :  { %1123 = vmatpush3.bf16.msra.mxu0 %v1160_v46 }
 0x98d   :  { %v749_v40 = vpop.f32.mrb[20].mxu0 }
 0x98e   :  { %v756_v41 = vpack.c.bf16 %v749_v40, %v749_v40  ;;  %v1106_v42 = vpop.f32.mrb[21].mxu0 }
 0x98f   :  { %v752_v43 = vpop.f32.mrb[22].mxu0 }
 0x990   :  { %v1107_v44 = vpop.f32.mrb[23].mxu0  ;;  %1117 = vmatmul.mubr.msk.bf16.vlgmr.msra.gmra.mrb[20].mxu1 %vm86_vm1, %v756_v41 }
 0xa63   :  { %v832_v48 = vpop.f32.mrb[20].mxu1 }
 0xa64   :  { %v833_v49 = vadd.f32 %v956_v47, %v832_v48  ;;  %v1118_v50 = vpop.f32.mrb[21].mxu1 }
 0xa65   :  { %v835_v51 = vpop.f32.mrb[22].mxu1 }
 0xa66   :  { %v838_v52 = vmax.f32 %v833_v49, 0.0  ;;  %v1119_v53 = vpop.f32.mrb[23].mxu1 }
 0xa68   :  { %v839_v54 = vpack.c.bf16 %v838_v52, %v838_v52 }
 0xa6a   :  { %1125 = vmatmul.mubr.msk.bf16.vlgmr.msra.gmra.mrb[24].mxu0 %vm864_vm3, %v839_v54 }
 0xb3d   :  { %v902_v55 = vpop.f32.mrb[24].mxu0 }
 0xb3e   :  { %v903_v56 = vadd.f32 %v963_v0, %v902_v55  ;;  %v1126_v57 = vpop.f32.mrb[25].mxu0 }
 0xb3f   :  { %v905_v58 = vpop.f32.mrb[26].mxu0 }
 0xb40   :  { %908 = vst [vmem:[%s1383_s8] sm:$0x3] %v903_v56  ;;  %v1127_v59 = vpop.f32.mrb[27].mxu0 }
 0xb41   :  { %913 = vsyncpa [#allocation3], 1 }

</bundles_post_ra>
